<compile_context>
chip_gen: v5e
topology: v5e:2x2
jax: 0.10.0
libtpu: 0.0.40
codegen_flags: <defaults>
</compile_context>

<pallas_src>
import functools

import jax
import jax.numpy as jnp
from jax.experimental import pallas as pl
from jax.experimental.pallas import tpu as pltpu


def _round_up(n: int, m: int) -> int:
    return (n + m - 1) // m * m


def _sml_kernel(seed_ref, x_ref, w_ref, b_ref, o_ref, *,
                drop_p, apply_sm, tile_b, d_pad):
    # seed_ref: SMEM int32[1] (scalar prefetch)
    # x_ref:    VMEM [tile_b, Dp] f32      (batch tile)
    # w_ref:    VMEM [Dp, Cp]     bf16     (W^T, padded, resident)
    # b_ref:    VMEM [1, Cp]      f32      (bias, padded cols = -1e30)
    # o_ref:    VMEM [tile_b, Cp] f32
    x = x_ref[...].astype(jnp.float32)

    if drop_p > 0.0:
        # Stateless hash PRNG keyed on (seed, global element index) so each
        # grid tile gets its own mask and no TPU-only PRNG primitive is used.
        row0 = (pl.program_id(0) * tile_b).astype(jnp.uint32)
        rows = jax.lax.broadcasted_iota(jnp.int32, x.shape, 0).astype(jnp.uint32) + row0
        cols = jax.lax.broadcasted_iota(jnp.int32, x.shape, 1).astype(jnp.uint32)
        h = rows * jnp.uint32(d_pad) + cols
        h = h ^ seed_ref[0].astype(jnp.uint32)
        # murmur3 finalizer: well-mixed 32-bit output, pure VPU int ops.
        h = h ^ (h >> 16)
        h = h * jnp.uint32(0x85EBCA6B)
        h = h ^ (h >> 13)
        h = h * jnp.uint32(0xC2B2AE35)
        h = h ^ (h >> 16)
        threshold = jnp.uint32(int(round(drop_p * 4294967296.0)) & 0xFFFFFFFF)
        keep = h >= threshold                              # P(keep) = 1 - p
        scale = jnp.float32(1.0 / (1.0 - drop_p))
        x = jnp.where(keep, x * scale, jnp.float32(0.0))

    # Linear: x @ W^T + b on the MXU (bf16 inputs, f32 accumulate).
    logits = jnp.dot(x.astype(w_ref.dtype), w_ref[...],
                     preferred_element_type=jnp.float32)
    logits = logits + b_ref[...]          # padded classes carry -1e30 bias

    if apply_sm:
        m = jnp.max(logits, axis=-1, keepdims=True)
        z = logits - m
        lse = jnp.log(jnp.sum(jnp.exp(z), axis=-1, keepdims=True))
        out = z - lse
    else:
        out = logits

    o_ref[...] = out.astype(o_ref.dtype)


def sm_linear_forward(x, weight, bias, *, drop_p=0.2, apply_sm=True, seed=0,
                      tile_b=256):
    """x: [B, D] f32, weight: [C, D] (torch layout), bias: [C]. Returns [B, C] f32."""
    B, D = x.shape
    C = weight.shape[0]

    Dp = _round_up(D, 128)                  # lane-dense contraction dim
    Cp = _round_up(C, 128)                  # lane-dense output dim
    tb = min(_round_up(B, 8), _round_up(tile_b, 8))
    Bp = _round_up(_round_up(B, 8), tb)

    # Parameter prep (in a real model, do this once at init, off the hot path).
    w_t = jnp.zeros((Dp, Cp), jnp.bfloat16).at[:D, :C].set(
        weight.T.astype(jnp.bfloat16))
    b2d = jnp.full((1, Cp), -1e30, jnp.float32).at[0, :C].set(
        bias.astype(jnp.float32))
    x_p = jnp.zeros((Bp, Dp), jnp.float32).at[:B, :D].set(
        x.astype(jnp.float32))
    seed_arr = jnp.array([seed], dtype=jnp.int32)

    kernel = functools.partial(_sml_kernel, drop_p=float(drop_p),
                               apply_sm=bool(apply_sm), tile_b=tb, d_pad=Dp)

    # VMEM budget: double-buffered x/out tiles + resident (buffered) W^T/bias.
    need = 2 * (tb * Dp * 4) + 2 * (tb * Cp * 4) + 2 * (Dp * Cp * 2 + Cp * 4)
    vmem_limit = int(min(max(2 * need, 4 << 20), 48 << 20))

    grid_spec = pltpu.PrefetchScalarGridSpec(
        num_scalar_prefetch=1,
        grid=(Bp // tb,),
        in_specs=[
            pl.BlockSpec((tb, Dp), lambda i, seed: (i, 0)),   # x batch tile
            pl.BlockSpec((Dp, Cp), lambda i, seed: (0, 0)),   # W^T resident
            pl.BlockSpec((1, Cp), lambda i, seed: (0, 0)),    # bias resident
        ],
        out_specs=pl.BlockSpec((tb, Cp), lambda i, seed: (i, 0)),
    )

    out_p = pl.pallas_call(
        kernel,
        out_shape=jax.ShapeDtypeStruct((Bp, Cp), jnp.float32),
        grid_spec=grid_spec,
        compiler_params=pltpu.CompilerParams(
            dimension_semantics=("parallel",),
            vmem_limit_bytes=vmem_limit,
        ),
    )(seed_arr, x_p, w_t, b2d)

    return out_p[:B, :C]


if __name__ == "__main__":
    # Small shapes implied by the forward: x [batch, input_size]
    batch, input_size, num_classes = 8, 32, 16

    key = jax.random.PRNGKey(0)
    kx, kw, kb = jax.random.split(key, 3)

    x = jax.random.normal(kx, (batch, input_size), dtype=jnp.float32)

    # Deterministic nn.Linear-style init: U(-1/sqrt(D), 1/sqrt(D))
    bound = 1.0 / (input_size ** 0.5)
    weight = jax.random.uniform(kw, (num_classes, input_size),
                                minval=-bound, maxval=bound, dtype=jnp.float32)
    bias = jax.random.uniform(kb, (num_classes,),
                              minval=-bound, maxval=bound, dtype=jnp.float32)

    # 1) Deterministic check (dropout disabled) against a pure-JAX reference.
    out_nodrop = sm_linear_forward(x, weight, bias, drop_p=0.0, apply_sm=True)
    jax.block_until_ready(out_nodrop)
    logits_ref = jnp.dot(x.astype(jnp.bfloat16), weight.T.astype(jnp.bfloat16),
                         preferred_element_type=jnp.float32) + bias[None, :]
    ref = jax.nn.log_softmax(logits_ref, axis=1)
    assert out_nodrop.shape == (batch, num_classes)
    assert jnp.allclose(out_nodrop, ref, atol=5e-3, rtol=5e-3), \
        float(jnp.max(jnp.abs(out_nodrop - ref)))

    # 2) Training-mode forward exactly like the PyTorch module (dropout on).
    out = sm_linear_forward(x, weight, bias, drop_p=0.2, apply_sm=True, seed=0)
    jax.block_until_ready(out)
    assert out.shape == (batch, num_classes)
    assert jnp.all(jnp.isfinite(out))
    # log_softmax rows must exponentiate-sum to 1
    assert jnp.allclose(jnp.sum(jnp.exp(out), axis=1), 1.0, atol=1e-3)

    print("KERNEL_OK")
</pallas_src>

<mosaic_0001>
module attributes {stable_mosaic.version = 11 : i64} {
  func.func @_sml_kernel(%arg0: i32, %arg1: memref<1xi32, #tpu.memory_space<smem>>, %arg2: memref<8x128xf32, #tpu.memory_space<vmem>>, %arg3: memref<128x128xbf16, #tpu.memory_space<vmem>>, %arg4: memref<1x128xf32, #tpu.memory_space<vmem>>, %arg5: memref<8x128xf32, #tpu.memory_space<vmem>>) attributes {dimension_semantics = [#tpu.dimension_semantics<parallel>], iteration_bounds = array<i64: 1>, scalar_prefetch = 1 : i64, scratch_operands = 0 : i64, tpu.core_type = #tpu.core_type<tc>, window_params = [{transform_indices = @transform_0, window_bounds = array<i64: 8, 128>}, {pipeline_mode = #tpu.pipeline_mode<synchronous>, transform_indices = @transform_1, window_bounds = array<i64: 128, 128>}, {pipeline_mode = #tpu.pipeline_mode<synchronous>, transform_indices = @transform_2, window_bounds = array<i64: 1, 128>}, {transform_indices = @transform_3, window_bounds = array<i64: 8, 128>}]} {
    %c0 = arith.constant 0 : index
    %c0_0 = arith.constant 0 : index
    %0 = vector.load %arg2[%c0, %c0_0] : memref<8x128xf32, #tpu.memory_space<vmem>>, vector<8x128xf32>
    %1 = arith.truncf %0 : vector<8x128xf32> to vector<8x128xbf16>
    %c0_1 = arith.constant 0 : index
    %c0_2 = arith.constant 0 : index
    %2 = vector.load %arg3[%c0_1, %c0_2] : memref<128x128xbf16, #tpu.memory_space<vmem>>, vector<128x128xbf16>
    %cst = arith.constant dense<0.000000e+00> : vector<8x128xf32>
    %3 = tpu.matmul %1, %2, %cst {dimension_numbers = #tpu.dot_dimension_numbers<[1], [0], [0], [1], [0, 0, 1, 1], [], []>} : vector<8x128xbf16>, vector<128x128xbf16>, vector<8x128xf32> -> vector<8x128xf32>
    %c0_3 = arith.constant 0 : index
    %c0_4 = arith.constant 0 : index
    %4 = vector.load %arg4[%c0_3, %c0_4] : memref<1x128xf32, #tpu.memory_space<vmem>>, vector<1x128xf32>
    %5 = vector.broadcast %4 : vector<1x128xf32> to vector<8x128xf32>
    %6 = arith.addf %3, %5 : vector<8x128xf32>
    %cst_5 = arith.constant dense<0xFF800000> : vector<8xf32>
    %7 = vector.multi_reduction <maximumf>, %6, %cst_5 [1] : vector<8x128xf32> to vector<8xf32>
    %8 = vector.shape_cast %7 : vector<8xf32> to vector<8x1xf32>
    %9 = vector.broadcast %8 : vector<8x1xf32> to vector<8x128xf32>
    %10 = arith.subf %6, %9 : vector<8x128xf32>
    %11 = math.exp %10 : vector<8x128xf32>
    %cst_6 = arith.constant dense<0.000000e+00> : vector<8xf32>
    %12 = vector.multi_reduction <add>, %11, %cst_6 [1] : vector<8x128xf32> to vector<8xf32>
    %13 = vector.shape_cast %12 : vector<8xf32> to vector<8x1xf32>
    %14 = math.log %13 : vector<8x1xf32>
    %15 = vector.broadcast %14 : vector<8x1xf32> to vector<8x128xf32>
    %16 = arith.subf %10, %15 : vector<8x128xf32>
    %c0_7 = arith.constant 0 : index
    %c0_8 = arith.constant 0 : index
    %17 = vector.load %arg5[%c0_7, %c0_8] : memref<8x128xf32, #tpu.memory_space<vmem>>, vector<8x128xf32>
    tpu.vector_store %arg5[%c0_7, %c0_8], %16 {strides = array<i32>} : memref<8x128xf32, #tpu.memory_space<vmem>>, vector<8x128xf32>,
    return
  }
  func.func @transform_0(%arg0: i32, %arg1: memref<1xi32, #tpu.memory_space<smem>>) -> (i32, i32) {
    %c0_i32 = arith.constant 0 : i32
    %c0_i32_0 = arith.constant 0 : i32
    return %arg0, %c0_i32 : i32, i32
  }
  func.func @transform_1(%arg0: i32, %arg1: memref<1xi32, #tpu.memory_space<smem>>) -> (i32, i32) {
    %c0_i32 = arith.constant 0 : i32
    %c0_i32_0 = arith.constant 0 : i32
    %c0_i32_1 = arith.constant 0 : i32
    return %c0_i32, %c0_i32_0 : i32, i32
  }
  func.func @transform_2(%arg0: i32, %arg1: memref<1xi32, #tpu.memory_space<smem>>) -> (i32, i32) {
    %c0_i32 = arith.constant 0 : i32
    %c0_i32_0 = arith.constant 0 : i32
    %c0_i32_1 = arith.constant 0 : i32
    return %c0_i32, %c0_i32_0 : i32, i32
  }
  func.func @transform_3(%arg0: i32, %arg1: memref<1xi32, #tpu.memory_space<smem>>) -> (i32, i32) {
    %c0_i32 = arith.constant 0 : i32
    %c0_i32_0 = arith.constant 0 : i32
    return %arg0, %c0_i32 : i32, i32
  }
}

</mosaic_0001>

<bundles_post_ra>
// kernel: tpu_custom_call.1
= control target key start
LH: loop header
LB: loop body
LE: loop exit
PB: predicated region body
PF: predicated region fallthrough
CT: control target
= control target key end

     0   :  { %10 = vsyncpa [#allocation5], 0  ;;  %s329_s0 = inlined_call_operand.<no memory space> [shape: s32[1], index: 0, kind: input, shape index: {}]   ;;  %s330_s1 = inlined_call_operand.hbm [shape: f32[8,128], index: 1, kind: input, shape index: {}]   ;;  %s331_s2 = inlined_call_operand.hbm [shape: bf16[128,128], index: 2, kind: input, shape index: {}]   ;;  %s332_s3 = inlined_call_operand.vmem [shape: f32[1,128], index: 3, kind: input, shape index: {}]   ;;  %s333_s4 = inlined_call_operand.hbm [shape: f32[8,128], index: 4, kind: output, shape index: {}]  }
   0x1   :  { %11 = vsyncpa [#allocation8], 0 }
   0x2   :  { %12 = vsyncpa [#allocation6], 0  ;;  %s18_s17 = sshll.u32 %s330_s1, 4  ;;  %s287_s0 = smov [#allocation4]   ;;  %s19_s17 = int_to_ptr.hbm [resolvable:$true] %s18_s17 }
   0x3   :  { %s20_s18 = sshll.u32 %s287_s0, 4  ;;  %s28_s21 = sshll.u32 %s331_s2, 4  ;;  %s21_s18 = int_to_ptr.vmem [resolvable:$true] %s20_s18  ;;  %s29_s21 = int_to_ptr.hbm [resolvable:$true] %s28_s21 }
   0x4   :  { %23 = dma.hbm_to_vmem [thread:$0]  %s19_s17, 128, %s21_s18, [#allocation5]  }
   0x5   :  { %s288_s22 = smov [#allocation7]   ;;  %s289_s24 = smov 64  }
   0x6   :  { %s30_s23 = sshll.u32 %s288_s22, 4  ;;  %s290_s25 = smov 4   ;;  %s31_s23 = int_to_ptr.vmem [resolvable:$true] %s30_s23 }
   0x7   :  { %36 = dma.hbm_to_vmem [thread:$0]  %s29_s21, 1024, %s31_s23, [#allocation8], %s289_s24, %s289_s24, %s290_s25  }
   0x8   :  { %281 = dma.done.wait [#allocation5], 128  }
   0x9   :  { %282 = vsyncadd [#allocation5], 4294967168 }
   0xa   :  { %283 = dma.done.wait [#allocation8], 1024  }
   0xb   :  { %284 = vsyncadd [#allocation8], 4294966272  ;;  %v198_v0 = vld [vmem:[#allocation7 + $0x38] sm:$0xff]  ;;  %v197_v1 = vld [vmem:[#allocation7 + $0x30] sm:$0xff]  ;;  %s291_s26 = smov [#allocation9]   ;;  %s148_s30 = sshll.u32 %s333_s4, 4  ;;  %s149_s30 = int_to_ptr.hbm [resolvable:$true] %s148_s30 }
   0xc   :  { %117 = vmatpush.bf16.msra.mxu0 %v198_v0  ;;  %v196_v2 = vld [vmem:[#allocation7 + $0x28] sm:$0xff]  ;;  %v195_v3 = vld [vmem:[#allocation7 + $0x20] sm:$0xff]  ;;  %v194_v4 = vld [vmem:[#allocation7 + $0x18] sm:$0xff]  ;;  %s146_s27 = sshll.u32 %s291_s26, 4  ;;  %s147_s27 = int_to_ptr.vmem [resolvable:$true] %s146_s27 }
   0xd   :  { %v193_v5 = vld [vmem:[#allocation7 + $0x10] sm:$0xff]  ;;  %v192_v6 = vld [vmem:[#allocation7 + $0x8] sm:$0xff]  ;;  %v191_v7 = vld [vmem:[#allocation7] sm:$0xff] }
   0xe   :  { %v47_v8 = vld [vmem:[#allocation4] sm:$0xff] }
   0xf   :  { %v48_v9 = vpack.c.bf16 %v47_v8, %v47_v8  ;;  %v204_v10 = vld [vmem:[%s332_s3] ss:$0 sm:$0xff] }
  0x10   :  { %118 = vmatpush.bf16.msra.mxu0 %v197_v1 }
  0x14   :  { %119 = vmatpush.bf16.msra.mxu0 %v196_v2 }
  0x18   :  { %120 = vmatpush.bf16.msra.mxu0 %v195_v3 }
  0x1c   :  { %121 = vmatpush.bf16.msra.mxu0 %v194_v4 }
  0x20   :  { %122 = vmatpush.bf16.msra.mxu0 %v193_v5 }
  0x24   :  { %123 = vmatpush.bf16.msra.mxu0 %v192_v6 }
  0x28   :  { %124 = vmatpush.bf16.msra.mxu0 %v191_v7 }
  0x2b   :  { %125 = vmatmul.bf16.vlgmr.msra.gmra.mxu0 %v48_v9 }
  0xa8   :  { %v126_v11 = vpop.f32.mrf.mxu0 }
  0xa9   :  { %v127_v12 = vadd.f32 %v204_v10, %v126_v11 }
  0xab   :  { %130 = vmax.xlane.f32.xlu0 %v127_v12 }
  0xb0   :  { %v128_v13 = vpop.f32.mrf.mxu0 }
 0x11e   :  { %v131_v14 = vpop.xlane.xlu0 %130 }
 0x11f   :  { %v132_v15 = vsub.f32 %v127_v12, %v131_v14 }
 0x121   :  { %v133_v16 = vmul.f32 1.442695, %v132_v15 }
 0x123   :  { %205 = vpow2.f32 %v133_v16 }
 0x129   :  { %v206_v17 = vpop.eup %205 }
 0x12a   :  { %135 = vadd.xlane.f32.xlu0 %v206_v17 }
 0x19d   :  { %v136_v18 = vpop.xlane.xlu0 %135 }
 0x19e   :  { %207 = vlog2.f32 %v136_v18 }
 0x1a4   :  { %v208_v19 = vpop.eup %207 }
 0x1a5   :  { %v138_v20 = vmul.f32 0.6931472, %v208_v19 }
 0x1a7   :  { %v139_v21 = vsub.f32 %v132_v15, %v138_v20 }
 0x1a9   :  { %140 = vst [vmem:[#allocation9] sm:$0xff] %v139_v21 }
 0x1aa   :  { %151 = dma.vmem_to_hbm [thread:$0]  %s147_s27, 128, %s149_s30, [#allocation6]  }
 0x1ab   :  { %285 = dma.done.wait [#allocation6], 128  }
 0x1ac   :  { %286 = vsyncadd [#allocation6], 4294967168 }
 0x1ad   :  { %156 = vsyncpa [#allocation5], 1 }
 0x1ae   :  { %157 = vsyncpa [#allocation8], 1 }
 0x1af   :  { %158 = vsyncpa [#allocation6], 1 }

</bundles_post_ra>
